<compile_context>
chip_gen: v6e
topology: v6e:2x2x1
jax: 0.10.0
libtpu: 0.0.40
codegen_flags: <defaults>
</compile_context>

<pallas_src>
import jax
import jax.numpy as jnp
import numpy as np
from jax.experimental import pallas as pl
from jax.experimental.pallas import tpu as pltpu


def _identity_copy_kernel(x_ref, o_ref):
    # The whole forward pass is `return inp`: a straight VMEM tile copy.
    o_ref[...] = x_ref[...]


def _materialized_identity(x):
    """pallas_call producing a *distinct* output buffer bitwise-equal to x."""
    if x.size == 0:
        return x

    orig_shape = x.shape
    # Flatten to 2-D (rows, feat) so the last (lane) dim stays dense.
    x2 = x.reshape(1, -1) if x.ndim < 2 else x.reshape(-1, x.shape[-1])
    rows, feat = x2.shape
    itemsize = jnp.dtype(x.dtype).itemsize

    # Full-width row tiles: big enough to amortize the ~0.35 us per-grid-step
    # pipeline overhead, small enough that double-buffered in+out tiles fit
    # comfortably in VMEM on every generation (v7x has only 64 MiB).
    max_tile_bytes = 2 * 1024 * 1024
    tile_rows = min(rows, max(8, max_tile_bytes // max(1, feat * itemsize)))
    if tile_rows < rows:
        # Partial tiles: keep the sublane dim a multiple of 8; the block shape
        # is exempt when it equals the full array dims (tile_rows == rows).
        tile_rows = max(8, (tile_rows // 8) * 8)

    grid = (pl.cdiv(rows, tile_rows),)
    out2 = pl.pallas_call(
        _identity_copy_kernel,
        out_shape=jax.ShapeDtypeStruct((rows, feat), x.dtype),
        grid=grid,
        in_specs=[pl.BlockSpec((tile_rows, feat), lambda i: (i, 0))],
        out_specs=pl.BlockSpec((tile_rows, feat), lambda i: (i, 0)),
        compiler_params=pltpu.CompilerParams(
            dimension_semantics=("parallel",)),
        cost_estimate=pl.CostEstimate(
            flops=0, transcendentals=0,
            bytes_accessed=2 * rows * feat * itemsize),
    )(x2)
    return out2.reshape(orig_shape)


def nocpc_forward(x, *, materialize=False):
    """Pallas/JAX implementation of NoCPC.forward(inp) -> inp.

    materialize=False (default): pure identity — no kernel launch, no HBM
        traffic, no fusion barrier (the highest-value path per perf review).
    materialize=True: return a distinct output buffer via a Pallas copy kernel.
    """
    if not materialize:
        return x
    return _materialized_identity(x)


# stash_state / pop_state / reset_state of the original module are no-ops.
def nocpc_stash_state():
    pass


def nocpc_pop_state():
    pass


def nocpc_reset_state():
    pass


if __name__ == "__main__":
    key = jax.random.PRNGKey(0)
    B, T, F = 2, 8, 80  # (batch, time, feat_dim=80) — matches the module spec
    x = jax.random.normal(key, (B, T, F), dtype=jnp.float32)
    x_host = np.asarray(jax.device_get(x))

    # Default path: free XLA-level identity.
    out_default = jax.block_until_ready(nocpc_forward(x))
    # Kernel path: distinct output buffer via the Pallas copy kernel.
    out_kernel = jax.block_until_ready(nocpc_forward(x, materialize=True))

    assert out_default.shape == x.shape and out_default.dtype == x.dtype
    assert out_kernel.shape == x.shape and out_kernel.dtype == x.dtype
    assert np.array_equal(np.asarray(jax.device_get(out_default)), x_host)
    assert np.array_equal(np.asarray(jax.device_get(out_kernel)), x_host)
    print("KERNEL_OK")
</pallas_src>

<mosaic_0001>
module attributes {stable_mosaic.version = 11 : i64} {
  func.func @_identity_copy_kernel(%arg0: i32, %arg1: memref<16x80xf32, #tpu.memory_space<vmem>>, %arg2: memref<16x80xf32, #tpu.memory_space<vmem>>) attributes {dimension_semantics = [#tpu.dimension_semantics<parallel>], iteration_bounds = array<i64: 1>, scalar_prefetch = 0 : i64, scratch_operands = 0 : i64, tpu.core_type = #tpu.core_type<tc>, window_params = [{transform_indices = @transform_0, window_bounds = array<i64: 16, 80>}, {transform_indices = @transform_1, window_bounds = array<i64: 16, 80>}]} {
    %c0 = arith.constant 0 : index
    %c0_0 = arith.constant 0 : index
    %0 = vector.load %arg1[%c0, %c0_0] : memref<16x80xf32, #tpu.memory_space<vmem>>, vector<16x80xf32>
    %c0_1 = arith.constant 0 : index
    %c0_2 = arith.constant 0 : index
    %1 = vector.load %arg2[%c0_1, %c0_2] : memref<16x80xf32, #tpu.memory_space<vmem>>, vector<16x80xf32>
    tpu.vector_store %arg2[%c0_1, %c0_2], %0 {strides = array<i32>} : memref<16x80xf32, #tpu.memory_space<vmem>>, vector<16x80xf32>,
    return
  }
  func.func @transform_0(%arg0: i32) -> (i32, i32) {
    %c0_i32 = arith.constant 0 : i32
    %c0_i32_0 = arith.constant 0 : i32
    return %arg0, %c0_i32 : i32, i32
  }
  func.func @transform_1(%arg0: i32) -> (i32, i32) {
    %c0_i32 = arith.constant 0 : i32
    %c0_i32_0 = arith.constant 0 : i32
    return %arg0, %c0_i32 : i32, i32
  }
}

</mosaic_0001>

<bundles_post_ra>
// kernel: tpu_custom_call.1
= control target key start
LH: loop header
LB: loop body
LE: loop exit
PB: predicated region body
PF: predicated region fallthrough
CT: control target
= control target key end

     0   :  { %6 = vsyncpa [#allocation3], 0  ;;  %s113_s0 = inlined_call_operand.hbm [shape: f32[16,80], index: 0, kind: input, shape index: {}]   ;;  %s114_s1 = inlined_call_operand.hbm [shape: f32[16,80], index: 1, kind: output, shape index: {}]  }
   0x1   :  { %7 = vsyncpa [#allocation4], 0  ;;  %s93_s6 = smov [#allocation2]  }
   0x2   :  { %s13_s7 = sshll.u32 %s93_s6, 4  ;;  %s14_s7 = int_to_ptr.vmem [resolvable:$true] %s13_s7 }
   0x3   :  { %s57_s8 = scalar_lea.vmem %s14_s7, 256  ;;  %p62_p1 = scmp.lt.s32.totalorder %s14_s7, %s14_s7 }
   0x4   :  { %p58_p0 = scmp.ne.s32.totalorder %s14_s7, %s57_s8  ;;  %p63_p2 = scmp.lt.s32.totalorder %s57_s8, %s57_s8 }
   0x6   :  { %p64_p3 = por %p63_p2, %p62_p1 }
   0x8   :  { %p65_p4 = pnand %p64_p3, %p58_p0 }
   0xa   :  { %68 = shalt.err (!%p65_p4)
}
   0xb   :  { %s94_s9 = smov 128   ;;  %s95_s10 = smov 8  }
   0xc   :  { %19 = dma.hbm_to_vmem [thread:$0]  %s113_s0, 256, %s14_s7, [#allocation3], %s94_s9, %s94_s9, %s95_s10  }
   0xd   :  { %89 = dma.done.wait [#allocation3], 256  }
   0xe   :  { %90 = vsyncadd [#allocation3], 4294967040  ;;  %s96_s13 = smov [#allocation5]   ;;  %vm25_vm0 = vcmask 654336   ;;  %v23_v0 = vld [vmem:[#allocation2] sm:$0xff]  ;;  %v24_v1 = vld [vmem:[#allocation2 + $0x8] sm:$0xff] }
   0xf   :  { %s33_s14 = sshll.u32 %s96_s13, 4  ;;  %26 = vst.msk [vmem:[#allocation5] sm:$0xff] %vm25_vm0, %v23_v0  ;;  %27 = vst.msk [vmem:[#allocation5 + $0x8] sm:$0xff] %vm25_vm0, %v24_v1  ;;  %s34_s14 = int_to_ptr.vmem [resolvable:$true] %s33_s14 }
  0x10   :  { %s69_s15 = scalar_lea.vmem %s34_s14, 256  ;;  %p74_p6 = scmp.lt.s32.totalorder %s34_s14, %s34_s14 }
  0x11   :  { %p70_p5 = scmp.ne.s32.totalorder %s34_s14, %s69_s15  ;;  %p75_p7 = scmp.lt.s32.totalorder %s69_s15, %s69_s15 }
  0x13   :  { %p76_p8 = por %p75_p7, %p74_p6 }
  0x15   :  { %p77_p9 = pnand %p76_p8, %p70_p5 }
  0x17   :  { %80 = shalt.err (!%p77_p9)
}
  0x18   :  { %39 = dma.vmem_to_hbm [thread:$0]  %s34_s14, 256, %s114_s1, [#allocation4], %s94_s9, %s94_s9, %s95_s10  }
  0x19   :  { %91 = dma.done.wait [#allocation4], 256  }
  0x1a   :  { %92 = vsyncadd [#allocation4], 4294967040 }
  0x1b   :  { %43 = vsyncpa [#allocation3], 1 }
  0x1c   :  { %44 = vsyncpa [#allocation4], 1 }

</bundles_post_ra>
